<compile_context>
chip_gen: v7x
topology: tpu7x:2x2x1
jax: 0.10.0
libtpu: 0.0.40
codegen_flags: <defaults>
</compile_context>

<pallas_src>
import functools

import jax
import jax.numpy as jnp
from jax.experimental import pallas as pl
from jax.experimental.pallas import tpu as pltpu

# ---------------- hyper-params (stand-ins for argparse `args`) -------------
NUM_FEATURES = 8
HIDDEN = 32
NUM_CLASSES = 4
NUM_LAYER = 3          # -> one middle GCN layer per branch
NUM_NODES = 16
NUM_EDGES = 40
# dropout p is irrelevant: model is evaluated with training=False (identity).


# ---------------------------- fused Pallas kernel ---------------------------
def _fused_forward_kernel(*refs, num_mid):
    """Entire OurModel forward in one kernel.

    Ref order (inputs): a1, a2, x,
                        conv1_1 (w, b), conv1_2 (w, b),
                        [mid layer i: convs_1[i] (w, b), convs_2[i] (w, b)] * num_mid,
                        conv2_1 (w, b), conv2_2 (w, b)
    Ref order (outputs): out, x11, x12
    """
    idx = 0

    def nxt():
        nonlocal idx
        r = refs[idx]
        idx += 1
        return r

    a1 = nxt()[...]
    a2 = nxt()[...]
    x = nxt()[...]
    w11, b11 = nxt()[...], nxt()[...]
    w12, b12 = nxt()[...], nxt()[...]
    mids = []
    for _ in range(num_mid):
        mids.append((nxt()[...], nxt()[...], nxt()[...], nxt()[...]))
    w21, b21 = nxt()[...], nxt()[...]
    w22, b22 = nxt()[...], nxt()[...]
    out_ref, x11_ref, x12_ref = refs[idx], refs[idx + 1], refs[idx + 2]

    def gcn(a, h, w, b, relu):
        f_in, f_out = w.shape
        if f_in <= f_out:
            # (A @ H) @ W  — cheaper when the input feature dim is narrower.
            y = jnp.dot(jnp.dot(a, h, preferred_element_type=jnp.float32), w,
                        preferred_element_type=jnp.float32) + b
        else:
            # A @ (H @ W)
            y = jnp.dot(a, jnp.dot(h, w, preferred_element_type=jnp.float32),
                        preferred_element_type=jnp.float32) + b
        if relu:
            y = jnp.maximum(y, 0.0)
        return y

    # first GCN layer per branch (+ ReLU; dropout = identity at eval time)
    x1 = gcn(a1, x, w11, b11, True)
    x2 = gcn(a2, x, w12, b12, True)
    # middle layers
    for (wm1, bm1, wm2, bm2) in mids:
        x1 = gcn(a1, x1, wm1, bm1, True)
        x2 = gcn(a2, x2, wm2, bm2, True)
    # output GCN layers (no activation)
    x11 = gcn(a1, x1, w21, b21, False)
    x12 = gcn(a2, x2, w22, b22, False)

    # NOTE: fc_1/fc_2 gating, x_max and x_mean in the PyTorch forward are dead
    # code (they do not feed any returned value) and are intentionally omitted.
    x_sum = x11 + x12
    m = jnp.max(x_sum, axis=1, keepdims=True)
    z = x_sum - m
    lse = jnp.log(jnp.sum(jnp.exp(z), axis=1, keepdims=True))

    out_ref[...] = (z - lse).astype(out_ref.dtype)
    x11_ref[...] = x11.astype(x11_ref.dtype)
    x12_ref[...] = x12.astype(x12_ref.dtype)


def our_model_forward(x, a1, a2, p):
    """Single fused pallas_call for the full forward pass."""
    n = x.shape[0]
    c = p["conv2_1_w"].shape[1]
    mids = list(zip(p["convs_1"], p["convs_2"]))
    num_mid = len(mids)

    args = [a1, a2, x,
            p["conv1_1_w"], p["conv1_1_b"].reshape(1, -1),
            p["conv1_2_w"], p["conv1_2_b"].reshape(1, -1)]
    for (w1, b1), (w2, b2) in mids:
        args += [w1, b1.reshape(1, -1), w2, b2.reshape(1, -1)]
    args += [p["conv2_1_w"], p["conv2_1_b"].reshape(1, -1),
             p["conv2_2_w"], p["conv2_2_b"].reshape(1, -1)]

    vmem = pl.BlockSpec(memory_space=pltpu.MemorySpace.VMEM)
    kernel = functools.partial(_fused_forward_kernel, num_mid=num_mid)

    out, x11, x12 = pl.pallas_call(
        kernel,
        out_shape=(jax.ShapeDtypeStruct((n, c), jnp.float32),
                   jax.ShapeDtypeStruct((n, c), jnp.float32),
                   jax.ShapeDtypeStruct((n, c), jnp.float32)),
        in_specs=[vmem] * len(args),
        out_specs=(vmem, vmem, vmem),
    )(*args)
    return out, x11, x12


# ------------------------------ glue (plain JAX) ----------------------------
def gcn_norm_dense(edge_index, num_nodes):
    """Dense D^-1/2 (A + I) D^-1/2 from a [2, E] edge_index (src -> dst).

    Follows PyG gcn_norm semantics: duplicate edges are summed (weight 1 each),
    and self-loops are added only for nodes that do not already have one
    (add_remaining_self_loops).
    """
    src, dst = edge_index[0], edge_index[1]
    a = jnp.zeros((num_nodes, num_nodes), jnp.float32).at[dst, src].add(1.0)
    diag = jnp.diagonal(a)
    a = a + jnp.diag(jnp.where(diag == 0.0, 1.0, 0.0))
    deg = jnp.sum(a, axis=1)
    d = jnp.where(deg > 0.0, jax.lax.rsqrt(jnp.maximum(deg, 1e-12)), 0.0)
    return a * d[:, None] * d[None, :]


def init_params(key):
    def dense(k, shape, scale=0.1):
        return scale * jax.random.normal(k, shape, jnp.float32)

    keys = jax.random.split(key, 20)
    p = {
        "conv1_1_w": dense(keys[0], (NUM_FEATURES, HIDDEN)),
        "conv1_1_b": dense(keys[1], (HIDDEN,)),
        "conv1_2_w": dense(keys[2], (NUM_FEATURES, HIDDEN)),
        "conv1_2_b": dense(keys[3], (HIDDEN,)),
        "conv2_1_w": dense(keys[4], (HIDDEN, NUM_CLASSES)),
        "conv2_1_b": dense(keys[5], (NUM_CLASSES,)),
        "conv2_2_w": dense(keys[6], (HIDDEN, NUM_CLASSES)),
        "conv2_2_b": dense(keys[7], (NUM_CLASSES,)),
        # fc_1/fc_2 are part of the PyTorch module but their outputs are never
        # used by anything the forward returns -> not fed to the kernel.
        "fc_1_w": dense(keys[8], (2 * NUM_CLASSES, NUM_CLASSES)),
        "fc_1_b": dense(keys[9], (NUM_CLASSES,)),
        "fc_2_w": dense(keys[10], (2 * NUM_CLASSES, NUM_CLASSES)),
        "fc_2_b": dense(keys[11], (NUM_CLASSES,)),
        "convs_1": [],
        "convs_2": [],
    }
    kk = jax.random.split(keys[12], 4 * max(NUM_LAYER - 2, 1))
    for layer in range(NUM_LAYER - 2):
        p["convs_1"].append((dense(kk[4 * layer + 0], (HIDDEN, HIDDEN)),
                             dense(kk[4 * layer + 1], (HIDDEN,))))
        p["convs_2"].append((dense(kk[4 * layer + 2], (HIDDEN, HIDDEN)),
                             dense(kk[4 * layer + 3], (HIDDEN,))))
    # NOTE: self.fc is defined in __init__ but never used in forward -> omitted.
    return p


def reference_forward(x, a1, a2, p):
    """Pure-JAX reference for a correctness sanity check."""
    gcn = lambda a, h, w, b: a @ (h @ w) + b
    x1 = jnp.maximum(gcn(a1, x, p["conv1_1_w"], p["conv1_1_b"]), 0.0)
    x2 = jnp.maximum(gcn(a2, x, p["conv1_2_w"], p["conv1_2_b"]), 0.0)
    for (w1, b1), (w2, b2) in zip(p["convs_1"], p["convs_2"]):
        x1 = jnp.maximum(gcn(a1, x1, w1, b1), 0.0)
        x2 = jnp.maximum(gcn(a2, x2, w2, b2), 0.0)
    x11 = gcn(a1, x1, p["conv2_1_w"], p["conv2_1_b"])
    x12 = gcn(a2, x2, p["conv2_2_w"], p["conv2_2_b"])
    x_sum = x11 + x12
    out = jax.nn.log_softmax(x_sum, axis=1)
    return out, x11, x12


if __name__ == "__main__":
    key = jax.random.PRNGKey(0)
    k_x, k_e1, k_e2, k_p = jax.random.split(key, 4)

    x = jax.random.normal(k_x, (NUM_NODES, NUM_FEATURES), jnp.float32)
    edge_index1 = jax.random.randint(k_e1, (2, NUM_EDGES), 0, NUM_NODES)
    edge_index2 = jax.random.randint(k_e2, (2, NUM_EDGES), 0, NUM_NODES)
    a1 = gcn_norm_dense(edge_index1, NUM_NODES)
    a2 = gcn_norm_dense(edge_index2, NUM_NODES)

    params = init_params(k_p)

    out, x11, x12 = jax.jit(our_model_forward)(x, a1, a2, params)
    jax.block_until_ready((out, x11, x12))

    ref_out, ref_x11, ref_x12 = reference_forward(x, a1, a2, params)
    assert jnp.allclose(out, ref_out, atol=1e-5, rtol=1e-5)
    assert jnp.allclose(x11, ref_x11, atol=1e-5, rtol=1e-5)
    assert jnp.allclose(x12, ref_x12, atol=1e-5, rtol=1e-5)

    print("KERNEL_OK")
</pallas_src>

<mosaic_0001>
module attributes {stable_mosaic.version = 11 : i64} {
  func.func @_fused_forward_kernel(%arg0: memref<16x16xf32, #tpu.memory_space<vmem>>, %arg1: memref<16x16xf32, #tpu.memory_space<vmem>>, %arg2: memref<16x8xf32, #tpu.memory_space<vmem>>, %arg3: memref<8x32xf32, #tpu.memory_space<vmem>>, %arg4: memref<1x32xf32, #tpu.memory_space<vmem>>, %arg5: memref<8x32xf32, #tpu.memory_space<vmem>>, %arg6: memref<1x32xf32, #tpu.memory_space<vmem>>, %arg7: memref<32x32xf32, #tpu.memory_space<vmem>>, %arg8: memref<1x32xf32, #tpu.memory_space<vmem>>, %arg9: memref<32x32xf32, #tpu.memory_space<vmem>>, %arg10: memref<1x32xf32, #tpu.memory_space<vmem>>, %arg11: memref<32x4xf32, #tpu.memory_space<vmem>>, %arg12: memref<1x4xf32, #tpu.memory_space<vmem>>, %arg13: memref<32x4xf32, #tpu.memory_space<vmem>>, %arg14: memref<1x4xf32, #tpu.memory_space<vmem>>, %arg15: memref<16x4xf32, #tpu.memory_space<vmem>>, %arg16: memref<16x4xf32, #tpu.memory_space<vmem>>, %arg17: memref<16x4xf32, #tpu.memory_space<vmem>>) attributes {dimension_semantics = [], scalar_prefetch = 0 : i64, scratch_operands = 0 : i64, tpu.core_type = #tpu.core_type<tc>} {
    %c0 = arith.constant 0 : index
    %c0_0 = arith.constant 0 : index
    %0 = vector.load %arg0[%c0, %c0_0] : memref<16x16xf32, #tpu.memory_space<vmem>>, vector<16x16xf32>
    %c0_1 = arith.constant 0 : index
    %c0_2 = arith.constant 0 : index
    %1 = vector.load %arg1[%c0_1, %c0_2] : memref<16x16xf32, #tpu.memory_space<vmem>>, vector<16x16xf32>
    %c0_3 = arith.constant 0 : index
    %c0_4 = arith.constant 0 : index
    %2 = vector.load %arg2[%c0_3, %c0_4] : memref<16x8xf32, #tpu.memory_space<vmem>>, vector<16x8xf32>
    %c0_5 = arith.constant 0 : index
    %c0_6 = arith.constant 0 : index
    %3 = vector.load %arg3[%c0_5, %c0_6] : memref<8x32xf32, #tpu.memory_space<vmem>>, vector<8x32xf32>
    %c0_7 = arith.constant 0 : index
    %c0_8 = arith.constant 0 : index
    %4 = vector.load %arg4[%c0_7, %c0_8] : memref<1x32xf32, #tpu.memory_space<vmem>>, vector<1x32xf32>
    %c0_9 = arith.constant 0 : index
    %c0_10 = arith.constant 0 : index
    %5 = vector.load %arg5[%c0_9, %c0_10] : memref<8x32xf32, #tpu.memory_space<vmem>>, vector<8x32xf32>
    %c0_11 = arith.constant 0 : index
    %c0_12 = arith.constant 0 : index
    %6 = vector.load %arg6[%c0_11, %c0_12] : memref<1x32xf32, #tpu.memory_space<vmem>>, vector<1x32xf32>
    %c0_13 = arith.constant 0 : index
    %c0_14 = arith.constant 0 : index
    %7 = vector.load %arg7[%c0_13, %c0_14] : memref<32x32xf32, #tpu.memory_space<vmem>>, vector<32x32xf32>
    %c0_15 = arith.constant 0 : index
    %c0_16 = arith.constant 0 : index
    %8 = vector.load %arg8[%c0_15, %c0_16] : memref<1x32xf32, #tpu.memory_space<vmem>>, vector<1x32xf32>
    %c0_17 = arith.constant 0 : index
    %c0_18 = arith.constant 0 : index
    %9 = vector.load %arg9[%c0_17, %c0_18] : memref<32x32xf32, #tpu.memory_space<vmem>>, vector<32x32xf32>
    %c0_19 = arith.constant 0 : index
    %c0_20 = arith.constant 0 : index
    %10 = vector.load %arg10[%c0_19, %c0_20] : memref<1x32xf32, #tpu.memory_space<vmem>>, vector<1x32xf32>
    %c0_21 = arith.constant 0 : index
    %c0_22 = arith.constant 0 : index
    %11 = vector.load %arg11[%c0_21, %c0_22] : memref<32x4xf32, #tpu.memory_space<vmem>>, vector<32x4xf32>
    %c0_23 = arith.constant 0 : index
    %c0_24 = arith.constant 0 : index
    %12 = vector.load %arg12[%c0_23, %c0_24] : memref<1x4xf32, #tpu.memory_space<vmem>>, vector<1x4xf32>
    %c0_25 = arith.constant 0 : index
    %c0_26 = arith.constant 0 : index
    %13 = vector.load %arg13[%c0_25, %c0_26] : memref<32x4xf32, #tpu.memory_space<vmem>>, vector<32x4xf32>
    %c0_27 = arith.constant 0 : index
    %c0_28 = arith.constant 0 : index
    %14 = vector.load %arg14[%c0_27, %c0_28] : memref<1x4xf32, #tpu.memory_space<vmem>>, vector<1x4xf32>
    %cst = arith.constant dense<0.000000e+00> : vector<16x8xf32>
    %15 = tpu.matmul %0, %2, %cst {dimension_numbers = #tpu.dot_dimension_numbers<[1], [0], [0], [1], [0, 0, 1, 1], [], []>} : vector<16x16xf32>, vector<16x8xf32>, vector<16x8xf32> -> vector<16x8xf32>
    %cst_29 = arith.constant dense<0.000000e+00> : vector<16x32xf32>
    %16 = tpu.matmul %15, %3, %cst_29 {dimension_numbers = #tpu.dot_dimension_numbers<[1], [0], [0], [1], [0, 0, 1, 1], [], []>} : vector<16x8xf32>, vector<8x32xf32>, vector<16x32xf32> -> vector<16x32xf32>
    %17 = vector.broadcast %4 : vector<1x32xf32> to vector<16x32xf32>
    %18 = arith.addf %16, %17 : vector<16x32xf32>
    %cst_30 = arith.constant 0.000000e+00 : f32
    %19 = vector.broadcast %cst_30 : f32 to vector<16x32xf32>
    %20 = arith.maximumf %18, %19 : vector<16x32xf32>
    %cst_31 = arith.constant dense<0.000000e+00> : vector<16x8xf32>
    %21 = tpu.matmul %1, %2, %cst_31 {dimension_numbers = #tpu.dot_dimension_numbers<[1], [0], [0], [1], [0, 0, 1, 1], [], []>} : vector<16x16xf32>, vector<16x8xf32>, vector<16x8xf32> -> vector<16x8xf32>
    %cst_32 = arith.constant dense<0.000000e+00> : vector<16x32xf32>
    %22 = tpu.matmul %21, %5, %cst_32 {dimension_numbers = #tpu.dot_dimension_numbers<[1], [0], [0], [1], [0, 0, 1, 1], [], []>} : vector<16x8xf32>, vector<8x32xf32>, vector<16x32xf32> -> vector<16x32xf32>
    %23 = vector.broadcast %6 : vector<1x32xf32> to vector<16x32xf32>
    %24 = arith.addf %22, %23 : vector<16x32xf32>
    %cst_33 = arith.constant 0.000000e+00 : f32
    %25 = vector.broadcast %cst_33 : f32 to vector<16x32xf32>
    %26 = arith.maximumf %24, %25 : vector<16x32xf32>
    %cst_34 = arith.constant dense<0.000000e+00> : vector<16x32xf32>
    %27 = tpu.matmul %0, %20, %cst_34 {dimension_numbers = #tpu.dot_dimension_numbers<[1], [0], [0], [1], [0, 0, 1, 1], [], []>} : vector<16x16xf32>, vector<16x32xf32>, vector<16x32xf32> -> vector<16x32xf32>
    %cst_35 = arith.constant dense<0.000000e+00> : vector<16x32xf32>
    %28 = tpu.matmul %27, %7, %cst_35 {dimension_numbers = #tpu.dot_dimension_numbers<[1], [0], [0], [1], [0, 0, 1, 1], [], []>} : vector<16x32xf32>, vector<32x32xf32>, vector<16x32xf32> -> vector<16x32xf32>
    %29 = vector.broadcast %8 : vector<1x32xf32> to vector<16x32xf32>
    %30 = arith.addf %28, %29 : vector<16x32xf32>
    %cst_36 = arith.constant 0.000000e+00 : f32
    %31 = vector.broadcast %cst_36 : f32 to vector<16x32xf32>
    %32 = arith.maximumf %30, %31 : vector<16x32xf32>
    %cst_37 = arith.constant dense<0.000000e+00> : vector<16x32xf32>
    %33 = tpu.matmul %1, %26, %cst_37 {dimension_numbers = #tpu.dot_dimension_numbers<[1], [0], [0], [1], [0, 0, 1, 1], [], []>} : vector<16x16xf32>, vector<16x32xf32>, vector<16x32xf32> -> vector<16x32xf32>
    %cst_38 = arith.constant dense<0.000000e+00> : vector<16x32xf32>
    %34 = tpu.matmul %33, %9, %cst_38 {dimension_numbers = #tpu.dot_dimension_numbers<[1], [0], [0], [1], [0, 0, 1, 1], [], []>} : vector<16x32xf32>, vector<32x32xf32>, vector<16x32xf32> -> vector<16x32xf32>
    %35 = vector.broadcast %10 : vector<1x32xf32> to vector<16x32xf32>
    %36 = arith.addf %34, %35 : vector<16x32xf32>
    %cst_39 = arith.constant 0.000000e+00 : f32
    %37 = vector.broadcast %cst_39 : f32 to vector<16x32xf32>
    %38 = arith.maximumf %36, %37 : vector<16x32xf32>
    %cst_40 = arith.constant dense<0.000000e+00> : vector<16x4xf32>
    %39 = tpu.matmul %32, %11, %cst_40 {dimension_numbers = #tpu.dot_dimension_numbers<[1], [0], [0], [1], [0, 0, 1, 1], [], []>} : vector<16x32xf32>, vector<32x4xf32>, vector<16x4xf32> -> vector<16x4xf32>
    %cst_41 = arith.constant dense<0.000000e+00> : vector<16x4xf32>
    %40 = tpu.matmul %0, %39, %cst_41 {dimension_numbers = #tpu.dot_dimension_numbers<[1], [0], [0], [1], [0, 0, 1, 1], [], []>} : vector<16x16xf32>, vector<16x4xf32>, vector<16x4xf32> -> vector<16x4xf32>
    %41 = vector.broadcast %12 : vector<1x4xf32> to vector<16x4xf32>
    %42 = arith.addf %40, %41 : vector<16x4xf32>
    %cst_42 = arith.constant dense<0.000000e+00> : vector<16x4xf32>
    %43 = tpu.matmul %38, %13, %cst_42 {dimension_numbers = #tpu.dot_dimension_numbers<[1], [0], [0], [1], [0, 0, 1, 1], [], []>} : vector<16x32xf32>, vector<32x4xf32>, vector<16x4xf32> -> vector<16x4xf32>
    %cst_43 = arith.constant dense<0.000000e+00> : vector<16x4xf32>
    %44 = tpu.matmul %1, %43, %cst_43 {dimension_numbers = #tpu.dot_dimension_numbers<[1], [0], [0], [1], [0, 0, 1, 1], [], []>} : vector<16x16xf32>, vector<16x4xf32>, vector<16x4xf32> -> vector<16x4xf32>
    %45 = vector.broadcast %14 : vector<1x4xf32> to vector<16x4xf32>
    %46 = arith.addf %44, %45 : vector<16x4xf32>
    %47 = arith.addf %42, %46 : vector<16x4xf32>
    %cst_44 = arith.constant dense<0xFF800000> : vector<16xf32>
    %48 = vector.multi_reduction <maximumf>, %47, %cst_44 [1] : vector<16x4xf32> to vector<16xf32>
    %49 = vector.shape_cast %48 : vector<16xf32> to vector<16x1xf32>
    %50 = vector.broadcast %49 : vector<16x1xf32> to vector<16x4xf32>
    %51 = arith.subf %47, %50 : vector<16x4xf32>
    %52 = math.exp %51 : vector<16x4xf32>
    %cst_45 = arith.constant dense<0.000000e+00> : vector<16xf32>
    %53 = vector.multi_reduction <add>, %52, %cst_45 [1] : vector<16x4xf32> to vector<16xf32>
    %54 = vector.shape_cast %53 : vector<16xf32> to vector<16x1xf32>
    %55 = math.log %54 : vector<16x1xf32>
    %56 = vector.broadcast %55 : vector<16x1xf32> to vector<16x4xf32>
    %57 = arith.subf %51, %56 : vector<16x4xf32>
    %c0_46 = arith.constant 0 : index
    %c0_47 = arith.constant 0 : index
    %58 = vector.load %arg15[%c0_46, %c0_47] : memref<16x4xf32, #tpu.memory_space<vmem>>, vector<16x4xf32>
    tpu.vector_store %arg15[%c0_46, %c0_47], %57 {strides = array<i32>} : memref<16x4xf32, #tpu.memory_space<vmem>>, vector<16x4xf32>,
    %c0_48 = arith.constant 0 : index
    %c0_49 = arith.constant 0 : index
    %59 = vector.load %arg16[%c0_48, %c0_49] : memref<16x4xf32, #tpu.memory_space<vmem>>, vector<16x4xf32>
    tpu.vector_store %arg16[%c0_48, %c0_49], %42 {strides = array<i32>} : memref<16x4xf32, #tpu.memory_space<vmem>>, vector<16x4xf32>,
    %c0_50 = arith.constant 0 : index
    %c0_51 = arith.constant 0 : index
    %60 = vector.load %arg17[%c0_50, %c0_51] : memref<16x4xf32, #tpu.memory_space<vmem>>, vector<16x4xf32>
    tpu.vector_store %arg17[%c0_50, %c0_51], %46 {strides = array<i32>} : memref<16x4xf32, #tpu.memory_space<vmem>>, vector<16x4xf32>,
    return
  }
}

</mosaic_0001>

<bundles_post_ra>
// kernel: our_model_forward.1
= control target key start
LH: loop header
LB: loop body
LE: loop exit
PB: predicated region body
PF: predicated region fallthrough
CT: control target
= control target key end

     0   :  { %vm83_vm0 = vcmask 130048   ;;  %vm171_vm1 = vcmask 64512   ;;  %vm506_vm2 = vcmask 261120   ;;  %vm1080_vm3 = vcmask 31744   ;;  %s1619_s2 = inlined_call_operand.vmem [shape: f32[16,8], index: 2, kind: input, shape index: {}]   ;;  %s1620_s0 = inlined_call_operand.vmem [shape: f32[16,16], index: 0, kind: input, shape index: {}]   ;;  %s1621_s3 = inlined_call_operand.vmem [shape: f32[8,32], index: 3, kind: input, shape index: {}]   ;;  %s1622_s1 = inlined_call_operand.vmem [shape: f32[16,16], index: 1, kind: input, shape index: {}]   ;;  %s1623_s5 = inlined_call_operand.vmem [shape: f32[8,32], index: 5, kind: input, shape index: {}]   ;;  %s1624_s4 = inlined_call_operand.vmem [shape: f32[1,32], index: 4, kind: input, shape index: {}]   ;;  %s1625_s7 = inlined_call_operand.vmem [shape: f32[32,32], index: 7, kind: input, shape index: {}]   ;;  %s1626_s6 = inlined_call_operand.vmem [shape: f32[1,32], index: 6, kind: input, shape index: {}]   ;;  %s1627_s9 = inlined_call_operand.vmem [shape: f32[32,32], index: 9, kind: input, shape index: {}]   ;;  %s1628_s11 = inlined_call_operand.vmem [shape: f32[32,4], index: 11, kind: input, shape index: {}]   ;;  %s1629_s13 = inlined_call_operand.vmem [shape: f32[32,4], index: 13, kind: input, shape index: {}]   ;;  %s1630_s8 = inlined_call_operand.vmem [shape: f32[1,32], index: 8, kind: input, shape index: {}]   ;;  %s1631_s10 = inlined_call_operand.vmem [shape: f32[1,32], index: 10, kind: input, shape index: {}]   ;;  %s1632_s12 = inlined_call_operand.vmem [shape: f32[1,4], index: 12, kind: input, shape index: {}]   ;;  %s1633_s16 = inlined_call_operand.vmem [shape: f32[16,4], index: 16, kind: output, shape index: {1}]   ;;  %s1634_s14 = inlined_call_operand.vmem [shape: f32[1,4], index: 14, kind: input, shape index: {}]   ;;  %s1635_s17 = inlined_call_operand.vmem [shape: f32[16,4], index: 17, kind: output, shape index: {2}]   ;;  %s1636_s15 = inlined_call_operand.vmem [shape: f32[16,4], index: 15, kind: output, shape index: {0}]  }
   0x1   :  { %1639 = sst [smem:[#allocation2_spill]] %s1619_s2  ;;  %v59_v5 = vld [vmem:[%s1621_s3] sm:$0xff]  ;;  %v1490_v9 = vld [vmem:[%s1622_s1 + $0x8] sm:$0xff]  ;;  %v65_v23 = vld [vmem:[%s1625_s7 + $0x10] sm:$0xff] }
   0x2   :  { %1640 = sst [smem:[#allocation3_spill]] %s1620_s0  ;;  %s1641_s26 = sld [smem:[#allocation2_spill]]  ;;  %1214 = vmatprep.subr.mxu1 %v59_v5  ;;  %v1483_v8 = vld [vmem:[%s1622_s1] sm:$0xff]  ;;  %v64_v22 = vld [vmem:[%s1625_s7 + $0x8] sm:$0xff]  ;;  %v66_v25 = vld [vmem:[%s1625_s7 + $0x18] sm:$0xff] }
   0x3   :  { %s1642_s30 = sld [smem:[#allocation3_spill]]  ;;  %1215 = vmatpush3.msra.mxu1 %v59_v5  ;;  %v61_v10 = vld [vmem:[%s1623_s5] sm:$0xff]  ;;  %v1319_v26 = vpack.c.bf16 %v66_v25, %v65_v23  ;;  %v69_v34 = vld [vmem:[%s1627_s9 + $0x8] sm:$0xff]  ;;  %v70_v40 = vld [vmem:[%s1627_s9 + $0x10] sm:$0xff] }
   0x4   :  { %v1125_v11 = vld [vmem:[%s1624_s4] ss:$0 sm:$0xff]  ;;  %v71_v41 = vld [vmem:[%s1627_s9 + $0x18] sm:$0xff]  ;;  %v74_v44 = vld [vmem:[%s1628_s11 + $0x8] sm:$0xff] }
   0x5   :  { %v63_v21 = vld [vmem:[%s1625_s7] sm:$0xff]  ;;  %v1331_v42 = vpack.c.bf16 %v71_v41, %v70_v40  ;;  %v75_v46 = vld [vmem:[%s1628_s11 + $0x10] sm:$0xff]  ;;  %v76_v47 = vld [vmem:[%s1628_s11 + $0x18] sm:$0xff] }
   0x6   :  { %v1315_v24 = vpack.c.bf16 %v64_v22, %v63_v21  ;;  %v1130_v27 = vld [vmem:[%s1626_s6] ss:$0 sm:$0xff]  ;;  %v1339_v48 = vpack.c.bf16 %v76_v47, %v75_v46  ;;  %v79_v50 = vld [vmem:[%s1629_s13 + $0x8] sm:$0xff]  ;;  %v80_v61 = vld [vmem:[%s1629_s13 + $0x10] sm:$0xff] }
   0x7   :  { %v68_v33 = vld [vmem:[%s1627_s9] sm:$0xff]  ;;  %v81_v62 = vld [vmem:[%s1629_s13 + $0x18] sm:$0xff] }
   0x8   :  { %v57_v0 = vld [vmem:[%s1641_s26] sm:$0xff]  ;;  %v58_v1 = vld [vmem:[%s1641_s26 + $0x8] sm:$0xff]  ;;  %v1327_v39 = vpack.c.bf16 %v69_v34, %v68_v33  ;;  %v1351_v63 = vpack.c.bf16 %v81_v62, %v80_v61 }
   0x9   :  { %v1466_v2 = vld [vmem:[%s1642_s30] sm:$0xff]  ;;  %v1303_v3 = vpack.c.bf16 %v58_v1, %v57_v0  ;;  %v1473_v4 = vld [vmem:[%s1642_s30 + $0x8] sm:$0xff] }
   0xa   :  { %1211 = vmatprep.mubr.msk.f32.mxu0 %vm83_vm0, %v1466_v2  ;;  %v73_v43 = vld [vmem:[%s1628_s11] sm:$0xff] }
   0xb   :  { %1304 = vmatprep.subr.bf16.mxu0 %v1303_v3  ;;  %1308 = vmatprep.subr.bf16.mxu1 %v1303_v3  ;;  %v1335_v45 = vpack.c.bf16 %v74_v44, %v73_v43  ;;  %v78_v49 = vld [vmem:[%s1629_s13] sm:$0xff] }
   0xc   :  { %1306 = vmatpush3.bf16.msra.mxu0 %v1303_v3  ;;  %v1347_v51 = vpack.c.bf16 %v79_v50, %v78_v49  ;;  %v1135_v52 = vld [vmem:[%s1630_s8] ss:$0 sm:$0xff] }
   0xd   :  { %1226 = vmatprep.subr.mxu0 %v61_v10  ;;  %v1140_v0 = vld [vmem:[%s1631_s10] ss:$0 sm:$0xff] }
   0xf   :  { %1212 = vmatmul.mubr.msk.f32.vlgmr.msra.gmra.mrb[0].mxu0 %vm83_vm0, %v1473_v4 }
  0x10   :  { %1227 = vmatpush3.msra.mxu0 %v61_v10 }
  0x11   :  { %1316 = vmatprep.subr.bf16.mxu0 %v1315_v24 }
  0xe2   :  { %v1213_v6 = vpop.f32.mrb[0].mxu0 }
  0xe3   :  { %v156_v7 = vpop.f32.mrb[1].mxu0 }
  0xe4   :  { %1216 = vmatprep.mubr.msk.f32.mxu1 %vm171_vm1, %v156_v7 }
  0xe5   :  { %1217 = vmatmul.mubr.msk.f32.vlgmr.msra.gmra.mrb[0].mxu1 %vm171_vm1, %v1213_v6 }
  0xe6   :  { %1310 = vmatpush3.bf16.msra.mxu1 %v1303_v3  ;;  %1223 = vmatprep.mubr.msk.f32.mxu1 %vm83_vm0, %v1483_v8 }
  0xe9   :  { %1224 = vmatmul.mubr.msk.f32.vlgmr.msra.gmra.mrb[2].mxu1 %vm83_vm0, %v1490_v9 }
  0xea   :  { %1235 = vmatprep.mubr.msk.f32.mxu1 %vm83_vm0, %v1466_v2 }
 0x1b8   :  { %v1218_v12 = vpop.f32.mrb[0].mxu1 }
 0x1b9   :  { %v250_v13 = vadd.f32 %v1218_v12, %v1125_v11  ;;  %v244_v14 = vpop.f32.mrb[1].mxu1 }
 0x1ba   :  { %v245_v15 = vadd.f32 %v1125_v11, %v244_v14 }
 0x1bb   :  { %v254_v16 = vmax.f32 %v250_v13, 0.0  ;;  %v1145_v13 = vld [vmem:[%s1632_s12] ss:$0 sm:$0xff] }
 0x1bc   :  { %v253_v17 = vmax.f32 %v245_v15, 0.0  ;;  %v1225_v18 = vpop.f32.mrb[2].mxu1 }
 0x1bd   :  { %v327_v19 = vpop.f32.mrb[3].mxu1 }
 0x1be   :  { %v1311_v20 = vpack.c.bf16 %v254_v16, %v253_v17  ;;  %1228 = vmatprep.mubr.msk.f32.mxu0 %vm171_vm1, %v327_v19 }
 0x1bf   :  { %1229 = vmatmul.mubr.msk.f32.vlgmr.msra.gmra.mrb[2].mxu0 %vm171_vm1, %v1225_v18 }
 0x1c0   :  { %1312 = vmatprep.subr.bf16.mxu1 %v1311_v20  ;;  %1318 = vmatpush3.bf16.msra.mxu0 %v1315_v24 }
 0x1c1   :  { %1314 = vmatpush3.bf16.msra.mxu1 %v1311_v20  ;;  %1320 = vmatprep.subr.bf16.mxu0 %v1319_v26 }
 0x1c4   :  { %1236 = vmatmul.mubr.msk.f32.vlgmr.msra.gmra.mrb[4].mxu1 %vm83_vm0, %v1473_v4  ;;  %1322 = vmatpush3.bf16.msra.mxu0 %v1319_v26 }
 0x1c5   :  { %1253 = vmatprep.mubr.msk.f32.mxu1 %vm83_vm0, %v1483_v8  ;;  %1336 = vmatprep.subr.bf16.mxu0 %v1335_v45 }
 0x292   :  { %v1230_v28 = vpop.f32.mrb[2].mxu0 }
 0x293   :  { %v420_v29 = vadd.f32 %v1230_v28, %v1130_v27  ;;  %v414_v30 = vpop.f32.mrb[3].mxu0 }
 0x294   :  { %v415_v31 = vadd.f32 %v1130_v27, %v414_v30 }
 0x295   :  { %v424_v32 = vmax.f32 %v420_v29, 0.0 }
 0x296   :  { %v423_v35 = vmax.f32 %v415_v31, 0.0 }
 0x297   :  { %v1237_v36 = vpop.f32.mrb[4].mxu1 }
 0x298   :  { %v1323_v37 = vpack.c.bf16 %v424_v32, %v423_v35  ;;  %v491_v38 = vpop.f32.mrb[5].mxu1 }
 0x299   :  { %1246 = vmatprep.mubr.msk.f32.mxu0 %vm506_vm2, %v491_v38 }
 0x29a   :  { %1324 = vmatprep.subr.bf16.mxu1 %v1323_v37  ;;  %1247 = vmatmul.mubr.msk.f32.vlgmr.msra.gmra.mrb[4].mxu0 %vm506_vm2, %v1237_v36 }
 0x29b   :  { %1326 = vmatpush3.bf16.msra.mxu1 %v1323_v37  ;;  %1338 = vmatpush3.bf16.msra.mxu0 %v1335_v45 }
 0x29c   :  { %1328 = vmatprep.subr.bf16.mxu1 %v1327_v39  ;;  %1340 = vmatprep.subr.bf16.mxu0 %v1339_v48 }
 0x29e   :  { %1254 = vmatmul.mubr.msk.f32.vlgmr.msra.gmra.mrb[6].mxu1 %vm83_vm0, %v1490_v9 }
 0x29f   :  { %1330 = vmatpush3.bf16.msra.mxu1 %v1327_v39  ;;  %1342 = vmatpush3.bf16.msra.mxu0 %v1339_v48 }
 0x2a0   :  { %1332 = vmatprep.subr.bf16.mxu1 %v1331_v42  ;;  %1348 = vmatprep.subr.bf16.mxu0 %v1347_v51 }
 0x2a3   :  { %1334 = vmatpush3.bf16.msra.mxu1 %v1331_v42 }
 0x36d   :  { %v1248_v53 = vpop.f32.mrb[4].mxu0 }
 0x36e   :  { %v585_v54 = vadd.f32 %v1248_v53, %v1135_v52  ;;  %v579_v55 = vpop.f32.mrb[5].mxu0 }
 0x36f   :  { %v580_v56 = vadd.f32 %v1135_v52, %v579_v55 }
 0x370   :  { %v589_v57 = vmax.f32 %v585_v54, 0.0 }
 0x371   :  { %v1255_v58 = vpop.f32.mrb[6].mxu1  ;;  %v588_v59 = vmax.f32 %v580_v56, 0.0 }
 0x372   :  { %v656_v60 = vpop.f32.mrb[7].mxu1 }
 0x373   :  { %1264 = vmatprep.mubr.msk.f32.mxu1 %vm506_vm2, %v656_v60  ;;  %1275 = vmatprep.mubr.msk.f32.mxu0 %vm506_vm2, %v588_v59 }
 0x374   :  { %1265 = vmatmul.mubr.msk.f32.vlgmr.msra.gmra.mrb[8].mxu1 %vm506_vm2, %v1255_v58  ;;  %1276 = vmatmul.mubr.msk.f32.vlgmr.msra.gmra.mrb[6].mxu0 %vm506_vm2, %v589_v57 }
 0x375   :  { %1350 = vmatpush3.bf16.msra.mxu0 %v1347_v51  ;;  %1282 = vmatprep.mubr.msk.f32.mxu1 %vm83_vm0, %v1466_v2 }
 0x376   :  { %1352 = vmatprep.subr.bf16.mxu0 %v1351_v63 }
 0x379   :  { %1354 = vmatpush3.bf16.msra.mxu0 %v1351_v63 }
 0x447   :  { %v1266_v1 = vpop.f32.mrb[8].mxu1  ;;  %v1277_v3 = vpop.f32.mrb[6].mxu0 }
 0x448   :  { %v749_v5 = vadd.f32 %v1266_v1, %v1140_v0  ;;  %v743_v6 = vpop.f32.mrb[9].mxu1  ;;  %v826_v2 = vpop.f32.mrb[7].mxu0 }
 0x449   :  { %v744_v7 = vadd.f32 %v1140_v0, %v743_v6  ;;  %v1343_v10 = vpack.c.bf16 %v1277_v3, %v826_v2 }
 0x44a   :  { %v753_v12 = vmax.f32 %v749_v5, 0.0 }
 0x44b   :  { %v752_v11 = vmax.f32 %v744_v7, 0.0  ;;  %1344 = vmatprep.subr.bf16.mxu1 %v1343_v10 }
 0x44c   :  { %1346 = vmatpush3.bf16.msra.mxu1 %v1343_v10 }
 0x44d   :  { %1293 = vmatprep.mubr.msk.f32.mxu0 %vm506_vm2, %v752_v11 }
 0x44e   :  { %1294 = vmatmul.mubr.msk.f32.vlgmr.msra.gmra.mrb[8].mxu0 %vm506_vm2, %v753_v12 }
 0x44f   :  { %1283 = vmatmul.mubr.msk.f32.vlgmr.msra.gmra.mrb[10].mxu1 %vm83_vm0, %v1473_v4  ;;  %v1150_v4 = vld [vmem:[%s1634_s14] ss:$0 sm:$0xff] }
 0x450   :  { %1300 = vmatprep.mubr.msk.f32.mxu1 %vm83_vm0, %v1483_v8 }
 0x521   :  { %v1295_v14 = vpop.f32.mrb[8].mxu0 }
 0x522   :  { %v988_v15 = vpop.f32.mrb[9].mxu0  ;;  %v1284_v16 = vpop.f32.mrb[10].mxu1 }
 0x523   :  { %v1355_v17 = vpack.c.bf16 %v1295_v14, %v988_v15  ;;  %v913_v18 = vadd.f32 %v1284_v16, %v1145_v13  ;;  %v907_v19 = vpop.f32.mrb[11].mxu1 }
 0x524   :  { %v908_v20 = vadd.f32 %v1145_v13, %v907_v19 }
 0x525   :  { %1356 = vmatprep.subr.bf16.mxu1 %v1355_v17  ;;  %1108 = vst.msk [vmem:[%s1633_s16 + $0x8] sm:$0xff] %vm1080_vm3, %v913_v18 }
 0x526   :  { %1358 = vmatpush3.bf16.msra.mxu1 %v1355_v17  ;;  %1107 = vst.msk [vmem:[%s1633_s16] sm:$0xff] %vm1080_vm3, %v908_v20 }
 0x529   :  { %1301 = vmatmul.mubr.msk.f32.vlgmr.msra.gmra.mrb[12].mxu1 %vm83_vm0, %v1490_v9 }
 0x5fc   :  { %v1302_v8 = vpop.f32.mrb[12].mxu1 }
 0x5fd   :  { %v1075_v21 = vadd.f32 %v1302_v8, %v1150_v4  ;;  %v1069_v22 = vpop.f32.mrb[13].mxu1 }
 0x5fe   :  { %v1070_v23 = vadd.f32 %v1150_v4, %v1069_v22 }
 0x5ff   :  { %1110 = vst.msk [vmem:[%s1635_s17 + $0x8] sm:$0xff] %vm1080_vm3, %v1075_v21  ;;  %v1079_v25 = vadd.f32 %v1075_v21, %v913_v18 }
 0x600   :  { %1109 = vst.msk [vmem:[%s1635_s17] sm:$0xff] %vm1080_vm3, %v1070_v23  ;;  %v1078_v24 = vadd.f32 %v1070_v23, %v908_v20 }
 0x601   :  { %v1084_v26 = vsel %vm1080_vm3, %v1079_v25, -inf }
 0x602   :  { %v1081_v9 = vsel %vm1080_vm3, %v1078_v24, -inf }
 0x603   :  { %1082 = vmax.xlane.f32.xlu0 %v1081_v9 }
 0x607   :  { %1085 = vmax.xlane.f32.xlu0 %v1084_v26 }
 0x690   :  { %v1083_v27 = vpop.xlane.xlu0 %1082 }
 0x691   :  { %v1087_v28 = vsub.f32 %v1078_v24, %v1083_v27 }
 0x693   :  { %v1089_v29 = vmul.f32 1.442695, %v1087_v28 }
 0x694   :  { %v1086_v30 = vpop.xlane.xlu0 %1085 }
 0x695   :  { %1359 = vpow2.f32 %v1089_v29  ;;  %v1088_v31 = vsub.f32 %v1079_v25, %v1086_v30 }
 0x697   :  { %v1091_v32 = vmul.f32 1.442695, %v1088_v31 }
 0x699   :  { %1361 = vpow2.f32 %v1091_v32 }
 0x69f   :  { %v1360_v33 = vpop.eup %1359 }
 0x6a0   :  { %v1093_v34 = vsel %vm1080_vm3, %v1360_v33, 0.0 }
 0x6a1   :  { %1094 = vadd.xlane.f32.xlu1 %v1093_v34 }
 0x6a3   :  { %v1362_v35 = vpop.eup %1361 }
 0x6a4   :  { %v1096_v36 = vsel %vm1080_vm3, %v1362_v35, 0.0 }
 0x6a5   :  { %1097 = vadd.xlane.f32.xlu1 %v1096_v36 }
 0x72e   :  { %v1095_v37 = vpop.xlane.xlu1 %1094 }
 0x72f   :  { %1363 = vlog2.f32 %v1095_v37 }
 0x732   :  { %v1098_v38 = vpop.xlane.xlu1 %1097 }
 0x733   :  { %1365 = vlog2.f32 %v1098_v38 }
 0x739   :  { %v1364_v39 = vpop.eup %1363 }
 0x73a   :  { %v1100_v40 = vmul.f32 0.6931472, %v1364_v39 }
 0x73c   :  { %v1103_v41 = vsub.f32 %v1087_v28, %v1100_v40 }
 0x73d   :  { %v1366_v42 = vpop.eup %1365 }
 0x73e   :  { %1105 = vst.msk [vmem:[%s1636_s15] sm:$0xff] %vm1080_vm3, %v1103_v41  ;;  %v1102_v43 = vmul.f32 0.6931472, %v1366_v42 }
 0x740   :  { %v1104_v44 = vsub.f32 %v1088_v31, %v1102_v43 }
 0x742   :  { %1106 = vst.msk [vmem:[%s1636_s15 + $0x8] sm:$0xff] %vm1080_vm3, %v1104_v44 }

</bundles_post_ra>
